<compile_context>
chip_gen: v5e
topology: v5e:2x2
jax: 0.10.0
libtpu: 0.0.40
codegen_flags: <defaults>
</compile_context>

<pallas_src>
import functools
import math

import jax
import jax.numpy as jnp
from jax.experimental import pallas as pl
from jax.experimental.pallas import tpu as pltpu

# ---- static config (module __init__ defaults, small example sizes) ----------
INPUT_DIM = 16          # number of original features to reconstruct
N_D = 8                 # prediction-layer dim
N_STEPS = 3
N_INDEPENDENT = 1
N_SHARED = 1
VIRTUAL_BATCH_SIZE = 128
BN_EPS = 1e-5
SQRT_HALF = math.sqrt(0.5)
SD = N_STEPS * N_D           # 24 fused (step, feature) lanes
SD2 = 2 * SD                 # 48 = value|gate lanes per fused GLU stage
MAX_CHUNKS_PER_STEP = 32     # up to 32 GBN chunks (4096 rows) per grid step


def _gbn(x, gamma, beta, n_chunks, vb):
    """Training-mode Ghost Batch Norm over consecutive `vb`-row chunks.

    Two-pass (mean, then centered variance) for numerical stability; biased
    variance and eps=1e-5 match torch.nn.BatchNorm1d.
    """
    lanes = x.shape[-1]
    x3 = x.reshape(n_chunks, vb, lanes)
    mean = jnp.mean(x3, axis=1, keepdims=True)
    xc = x3 - mean
    var = jnp.mean(xc * xc, axis=1, keepdims=True)
    y = (xc * jax.lax.rsqrt(var + BN_EPS)).reshape(x.shape)
    return y * gamma + beta


def tabnet_decoder_kernel(x_ref,      # [K*vb, SD]    fused step/feature slab
                          w_ref,      # [2*SD, 2*SD]  rows 0:SD stage-1, SD:2SD stage-2
                          bn_ref,     # [4, 2*SD]     rows: gamma1, beta1, gamma2, beta2
                          wrec_ref,   # [SD, INPUT_DIM]  sqrt(0.5)*tile(W_rec)
                          out_ref,    # [K*vb, INPUT_DIM]
                          *, k_chunks, vb):
    x = x_ref[...]

    # ---- stage 1 (shared GLU): one fused value|gate matmul, one BN pass ----
    p = jnp.dot(x, w_ref[0:SD, :], preferred_element_type=jnp.float32)   # [rows, 48]
    p = _gbn(p, bn_ref[0:1, :], bn_ref[1:2, :], k_chunks, vb)
    h = p[:, :SD] * jax.nn.sigmoid(p[:, SD:])                            # [rows, 24]

    # ---- stage 2 (per-step independent GLU, block-diagonal over steps) -----
    q = jnp.dot(h, w_ref[SD:SD2, :], preferred_element_type=jnp.float32)
    q = _gbn(q, bn_ref[2:3, :], bn_ref[3:4, :], k_chunks, vb)
    g = q[:, :SD] * jax.nn.sigmoid(q[:, SD:])

    # ---- reconstruction: step-sum and sqrt(0.5) scale are folded into wrec --
    out_ref[...] = jnp.dot(h + g, wrec_ref[...],
                           preferred_element_type=jnp.float32)


def _block_diag(blocks):
    """[S, D, E] -> block-diagonal [S*D, S*E] (wrapper-side, one-time)."""
    s, d, e = blocks.shape
    eye = jnp.eye(s, dtype=blocks.dtype)
    return jnp.einsum('st,sde->sdte', eye, blocks).reshape(s * d, s * e)


def _chunks_per_step(n_chunks, max_chunks=MAX_CHUNKS_PER_STEP):
    """Largest divisor of n_chunks <= max_chunks that keeps >= 2 grid steps."""
    if n_chunks <= 1:
        return 1
    best = 1
    for k in range(1, min(n_chunks, max_chunks) + 1):
        if n_chunks % k == 0 and n_chunks // k >= 2:
            best = k
    return best


def tabnet_decoder(steps, w_shared, w_ind, gs, bs, gi, bi, w_rec):
    batch = steps.shape[1]

    # ----- lane-dense repack (layout plumbing, done wrapper-side) -----------
    x_slab = jnp.transpose(steps, (1, 0, 2)).reshape(batch, SD)      # [B, S*D]

    # Block-diagonalize the GLU weights over steps and fuse value|gate halves
    # into one [SD, 2*SD] matrix per stage (one MXU push per stage).
    wsv = _block_diag(jnp.broadcast_to(w_shared[:, :N_D], (N_STEPS, N_D, N_D)))
    wsg = _block_diag(jnp.broadcast_to(w_shared[:, N_D:], (N_STEPS, N_D, N_D)))
    wiv = _block_diag(w_ind[:, :, :N_D])
    wig = _block_diag(w_ind[:, :, N_D:])
    w_cat = jnp.concatenate(
        [jnp.concatenate([wsv, wsg], axis=1),        # rows 0:SD   -> stage 1
         jnp.concatenate([wiv, wig], axis=1)],       # rows SD:2SD -> stage 2
        axis=0)                                      # [2*SD, 2*SD]

    # BN affine params, lane order = (value lanes | gate lanes), step-major.
    bnp = jnp.stack([
        jnp.concatenate([gs[:, :N_D].reshape(SD), gs[:, N_D:].reshape(SD)]),
        jnp.concatenate([bs[:, :N_D].reshape(SD), bs[:, N_D:].reshape(SD)]),
        jnp.concatenate([gi[:, :N_D].reshape(SD), gi[:, N_D:].reshape(SD)]),
        jnp.concatenate([bi[:, :N_D].reshape(SD), bi[:, N_D:].reshape(SD)]),
    ])                                               # [4, 2*SD]

    # Fold step-sum and sqrt(0.5) residual scale into the reconstruction weight.
    wrec_big = SQRT_HALF * jnp.tile(w_rec, (N_STEPS, 1))             # [S*D, IN]

    # ----- Ghost Batch Norm chunking -----------------------------------------
    vb = min(batch, VIRTUAL_BATCH_SIZE)
    assert batch % vb == 0, "batch must be <= or a multiple of virtual_batch_size"
    # TODO(synk): ragged final GBN chunk (batch not a multiple of vbs, pytorch
    # uses ~equal torch.chunk splits) unsupported.
    n_chunks = batch // vb
    k_chunks = _chunks_per_step(n_chunks)   # GBN chunks processed per grid step
    rows = k_chunks * vb
    grid = (n_chunks // k_chunks,)

    kernel = functools.partial(tabnet_decoder_kernel, k_chunks=k_chunks, vb=vb)

    return pl.pallas_call(
        kernel,
        out_shape=jax.ShapeDtypeStruct((batch, INPUT_DIM), jnp.float32),
        grid=grid,
        in_specs=[pl.BlockSpec((rows, SD), lambda b: (b, 0)),
                  pl.BlockSpec((SD2, SD2), lambda b: (0, 0)),
                  pl.BlockSpec((4, SD2), lambda b: (0, 0)),
                  pl.BlockSpec((SD, INPUT_DIM), lambda b: (0, 0))],
        out_specs=pl.BlockSpec((rows, INPUT_DIM), lambda b: (b, 0)),
        compiler_params=pltpu.CompilerParams(
            dimension_semantics=("parallel",)),   # batch blocks are independent
    )(x_slab, w_cat, bnp, wrec_big)


def _reference(steps, w_shared, w_ind, gs, bs, gi, bi, w_rec):
    """Pure-JAX, GBN-aware reference mirroring the PyTorch forward."""
    batch = steps.shape[1]
    vb = min(batch, VIRTUAL_BATCH_SIZE)

    def gbn(x, gamma, beta):
        n = x.shape[0] // vb
        x3 = x.reshape(n, vb, x.shape[-1])
        mean = jnp.mean(x3, axis=1, keepdims=True)
        var = jnp.mean((x3 - mean) ** 2, axis=1, keepdims=True)
        y = (x3 - mean) * jax.lax.rsqrt(var + BN_EPS)
        return y.reshape(x.shape) * gamma + beta

    def glu(x):
        return x[:, :N_D] * jax.nn.sigmoid(x[:, N_D:])

    res = jnp.zeros((batch, N_D), jnp.float32)
    for s in range(N_STEPS):
        h = glu(gbn(steps[s] @ w_shared, gs[s][None, :], bs[s][None, :]))
        g = glu(gbn(h @ w_ind[s], gi[s][None, :], bi[s][None, :]))
        res = res + (h + g) * SQRT_HALF
    return res @ w_rec


def _make_inputs(batch, key):
    k_steps, k_sh, k_ind, k_rec, k_bn = jax.random.split(key, 5)

    # encoder step outputs: list of N_STEPS tensors [B, N_D], stacked
    steps = jax.random.normal(k_steps, (N_STEPS, batch, N_D), jnp.float32)

    # xavier-normal-style deterministic init (shapes from the module __init__)
    gain_glu = math.sqrt((N_D + 2 * N_D) / math.sqrt(N_D))
    std_glu = gain_glu * math.sqrt(2.0 / (N_D + 2 * N_D))
    w_shared = std_glu * jax.random.normal(k_sh, (N_D, 2 * N_D), jnp.float32)
    w_ind = std_glu * jax.random.normal(k_ind, (N_STEPS, N_D, 2 * N_D), jnp.float32)

    gain_rec = math.sqrt((N_D + INPUT_DIM) / math.sqrt(4 * N_D))
    std_rec = gain_rec * math.sqrt(2.0 / (N_D + INPUT_DIM))
    w_rec = std_rec * jax.random.normal(k_rec, (N_D, INPUT_DIM), jnp.float32)

    # BatchNorm affine params, one set per GLU_Layer per step (the Linear is
    # shared across steps, the BN is not).  Perturb away from 1/0 so the
    # affine path is actually exercised by the test.
    kg1, kb1, kg2, kb2 = jax.random.split(k_bn, 4)
    gs = 1.0 + 0.1 * jax.random.normal(kg1, (N_STEPS, 2 * N_D), jnp.float32)
    bs = 0.1 * jax.random.normal(kb1, (N_STEPS, 2 * N_D), jnp.float32)
    gi = 1.0 + 0.1 * jax.random.normal(kg2, (N_STEPS, 2 * N_D), jnp.float32)
    bi = 0.1 * jax.random.normal(kb2, (N_STEPS, 2 * N_D), jnp.float32)
    return steps, w_shared, w_ind, gs, bs, gi, bi, w_rec


if __name__ == "__main__":
    key = jax.random.PRNGKey(0)

    # ---- test 1: small batch (single GBN chunk == full-batch BN, grid=(1,)) --
    args = _make_inputs(8, key)
    out = jax.block_until_ready(tabnet_decoder(*args))
    ref = _reference(*args)
    assert out.shape == (8, INPUT_DIM)
    assert jnp.allclose(out, ref, atol=1e-4, rtol=1e-4), "small-batch mismatch"

    # ---- test 2: GBN path (4 chunks of 128, 2 chunks per step, grid=(2,)) ---
    args = _make_inputs(512, jax.random.PRNGKey(1))
    out = jax.block_until_ready(tabnet_decoder(*args))
    ref = _reference(*args)
    assert out.shape == (512, INPUT_DIM)
    assert jnp.allclose(out, ref, atol=1e-4, rtol=1e-4), "GBN-batch mismatch"

    print("KERNEL_OK")
</pallas_src>

<mosaic_0001>
module attributes {stable_mosaic.version = 11 : i64} {
  func.func @tabnet_decoder_kernel(%arg0: i32, %arg1: memref<8x24xf32, #tpu.memory_space<vmem>>, %arg2: memref<48x48xf32, #tpu.memory_space<vmem>>, %arg3: memref<4x48xf32, #tpu.memory_space<vmem>>, %arg4: memref<24x16xf32, #tpu.memory_space<vmem>>, %arg5: memref<8x16xf32, #tpu.memory_space<vmem>>) attributes {dimension_semantics = [#tpu.dimension_semantics<parallel>], iteration_bounds = array<i64: 1>, scalar_prefetch = 0 : i64, scratch_operands = 0 : i64, tpu.core_type = #tpu.core_type<tc>, window_params = [{transform_indices = @transform_0, window_bounds = array<i64: 8, 24>}, {pipeline_mode = #tpu.pipeline_mode<synchronous>, transform_indices = @transform_1, window_bounds = array<i64: 48, 48>}, {pipeline_mode = #tpu.pipeline_mode<synchronous>, transform_indices = @transform_2, window_bounds = array<i64: 4, 48>}, {pipeline_mode = #tpu.pipeline_mode<synchronous>, transform_indices = @transform_3, window_bounds = array<i64: 24, 16>}, {transform_indices = @transform_4, window_bounds = array<i64: 8, 16>}]} {
    %c0 = arith.constant 0 : index
    %c0_0 = arith.constant 0 : index
    %0 = vector.load %arg1[%c0, %c0_0] : memref<8x24xf32, #tpu.memory_space<vmem>>, vector<8x24xf32>
    %c0_1 = arith.constant 0 : index
    %c0_2 = arith.constant 0 : index
    %1 = vector.load %arg2[%c0_1, %c0_2] : memref<48x48xf32, #tpu.memory_space<vmem>>, vector<24x48xf32>
    %cst = arith.constant dense<0.000000e+00> : vector<8x48xf32>
    %2 = tpu.matmul %0, %1, %cst {dimension_numbers = #tpu.dot_dimension_numbers<[1], [0], [0], [1], [0, 0, 1, 1], [], []>} : vector<8x24xf32>, vector<24x48xf32>, vector<8x48xf32> -> vector<8x48xf32>
    %c0_3 = arith.constant 0 : index
    %c0_4 = arith.constant 0 : index
    %3 = vector.load %arg3[%c0_3, %c0_4] : memref<4x48xf32, #tpu.memory_space<vmem>>, vector<1x48xf32>
    %c1 = arith.constant 1 : index
    %c0_5 = arith.constant 0 : index
    %4 = vector.load %arg3[%c1, %c0_5] : memref<4x48xf32, #tpu.memory_space<vmem>>, vector<1x48xf32>
    %5 = vector.shape_cast %2 : vector<8x48xf32> to vector<1x8x48xf32>
    %cst_6 = arith.constant dense<0.000000e+00> : vector<1x48xf32>
    %6 = vector.multi_reduction <add>, %5, %cst_6 [1] : vector<1x8x48xf32> to vector<1x48xf32>
    %7 = vector.shape_cast %6 : vector<1x48xf32> to vector<1x1x48xf32>
    %cst_7 = arith.constant 8.000000e+00 : f32
    %8 = vector.broadcast %cst_7 : f32 to vector<1x1x48xf32>
    %9 = arith.divf %7, %8 : vector<1x1x48xf32>
    %10 = vector.broadcast %9 : vector<1x1x48xf32> to vector<1x8x48xf32>
    %11 = arith.subf %5, %10 : vector<1x8x48xf32>
    %12 = arith.mulf %11, %11 : vector<1x8x48xf32>
    %cst_8 = arith.constant dense<0.000000e+00> : vector<1x48xf32>
    %13 = vector.multi_reduction <add>, %12, %cst_8 [1] : vector<1x8x48xf32> to vector<1x48xf32>
    %14 = vector.shape_cast %13 : vector<1x48xf32> to vector<1x1x48xf32>
    %cst_9 = arith.constant 8.000000e+00 : f32
    %15 = vector.broadcast %cst_9 : f32 to vector<1x1x48xf32>
    %16 = arith.divf %14, %15 : vector<1x1x48xf32>
    %cst_10 = arith.constant 9.99999974E-6 : f32
    %17 = vector.broadcast %cst_10 : f32 to vector<1x1x48xf32>
    %18 = arith.addf %16, %17 : vector<1x1x48xf32>
    %19 = math.rsqrt %18 : vector<1x1x48xf32>
    %20 = vector.broadcast %19 : vector<1x1x48xf32> to vector<1x8x48xf32>
    %21 = arith.mulf %11, %20 : vector<1x8x48xf32>
    %22 = vector.shape_cast %21 : vector<1x8x48xf32> to vector<8x48xf32>
    %23 = vector.broadcast %3 : vector<1x48xf32> to vector<8x48xf32>
    %24 = arith.mulf %22, %23 : vector<8x48xf32>
    %25 = vector.broadcast %4 : vector<1x48xf32> to vector<8x48xf32>
    %26 = arith.addf %24, %25 : vector<8x48xf32>
    %27 = vector.extract_strided_slice %26 {offsets = [0, 0], sizes = [8, 24], strides = [1, 1]} : vector<8x48xf32> to vector<8x24xf32>
    %28 = vector.extract_strided_slice %26 {offsets = [0, 24], sizes = [8, 24], strides = [1, 1]} : vector<8x48xf32> to vector<8x24xf32>
    %29 = arith.negf %28 : vector<8x24xf32>
    %30 = math.exp %29 : vector<8x24xf32>
    %cst_11 = arith.constant 1.000000e+00 : f32
    %31 = vector.broadcast %cst_11 : f32 to vector<8x24xf32>
    %32 = arith.addf %31, %30 : vector<8x24xf32>
    %33 = arith.divf %31, %32 : vector<8x24xf32>
    %34 = arith.mulf %27, %33 : vector<8x24xf32>
    %c24 = arith.constant 24 : index
    %c0_12 = arith.constant 0 : index
    %35 = vector.load %arg2[%c24, %c0_12] : memref<48x48xf32, #tpu.memory_space<vmem>>, vector<24x48xf32>
    %cst_13 = arith.constant dense<0.000000e+00> : vector<8x48xf32>
    %36 = tpu.matmul %34, %35, %cst_13 {dimension_numbers = #tpu.dot_dimension_numbers<[1], [0], [0], [1], [0, 0, 1, 1], [], []>} : vector<8x24xf32>, vector<24x48xf32>, vector<8x48xf32> -> vector<8x48xf32>
    %c2 = arith.constant 2 : index
    %c0_14 = arith.constant 0 : index
    %37 = vector.load %arg3[%c2, %c0_14] : memref<4x48xf32, #tpu.memory_space<vmem>>, vector<1x48xf32>
    %c3 = arith.constant 3 : index
    %c0_15 = arith.constant 0 : index
    %38 = vector.load %arg3[%c3, %c0_15] : memref<4x48xf32, #tpu.memory_space<vmem>>, vector<1x48xf32>
    %39 = vector.shape_cast %36 : vector<8x48xf32> to vector<1x8x48xf32>
    %cst_16 = arith.constant dense<0.000000e+00> : vector<1x48xf32>
    %40 = vector.multi_reduction <add>, %39, %cst_16 [1] : vector<1x8x48xf32> to vector<1x48xf32>
    %41 = vector.shape_cast %40 : vector<1x48xf32> to vector<1x1x48xf32>
    %cst_17 = arith.constant 8.000000e+00 : f32
    %42 = vector.broadcast %cst_17 : f32 to vector<1x1x48xf32>
    %43 = arith.divf %41, %42 : vector<1x1x48xf32>
    %44 = vector.broadcast %43 : vector<1x1x48xf32> to vector<1x8x48xf32>
    %45 = arith.subf %39, %44 : vector<1x8x48xf32>
    %46 = arith.mulf %45, %45 : vector<1x8x48xf32>
    %cst_18 = arith.constant dense<0.000000e+00> : vector<1x48xf32>
    %47 = vector.multi_reduction <add>, %46, %cst_18 [1] : vector<1x8x48xf32> to vector<1x48xf32>
    %48 = vector.shape_cast %47 : vector<1x48xf32> to vector<1x1x48xf32>
    %cst_19 = arith.constant 8.000000e+00 : f32
    %49 = vector.broadcast %cst_19 : f32 to vector<1x1x48xf32>
    %50 = arith.divf %48, %49 : vector<1x1x48xf32>
    %cst_20 = arith.constant 9.99999974E-6 : f32
    %51 = vector.broadcast %cst_20 : f32 to vector<1x1x48xf32>
    %52 = arith.addf %50, %51 : vector<1x1x48xf32>
    %53 = math.rsqrt %52 : vector<1x1x48xf32>
    %54 = vector.broadcast %53 : vector<1x1x48xf32> to vector<1x8x48xf32>
    %55 = arith.mulf %45, %54 : vector<1x8x48xf32>
    %56 = vector.shape_cast %55 : vector<1x8x48xf32> to vector<8x48xf32>
    %57 = vector.broadcast %37 : vector<1x48xf32> to vector<8x48xf32>
    %58 = arith.mulf %56, %57 : vector<8x48xf32>
    %59 = vector.broadcast %38 : vector<1x48xf32> to vector<8x48xf32>
    %60 = arith.addf %58, %59 : vector<8x48xf32>
    %61 = vector.extract_strided_slice %60 {offsets = [0, 0], sizes = [8, 24], strides = [1, 1]} : vector<8x48xf32> to vector<8x24xf32>
    %62 = vector.extract_strided_slice %60 {offsets = [0, 24], sizes = [8, 24], strides = [1, 1]} : vector<8x48xf32> to vector<8x24xf32>
    %63 = arith.negf %62 : vector<8x24xf32>
    %64 = math.exp %63 : vector<8x24xf32>
    %cst_21 = arith.constant 1.000000e+00 : f32
    %65 = vector.broadcast %cst_21 : f32 to vector<8x24xf32>
    %66 = arith.addf %65, %64 : vector<8x24xf32>
    %67 = arith.divf %65, %66 : vector<8x24xf32>
    %68 = arith.mulf %61, %67 : vector<8x24xf32>
    %69 = arith.addf %34, %68 : vector<8x24xf32>
    %c0_22 = arith.constant 0 : index
    %c0_23 = arith.constant 0 : index
    %70 = vector.load %arg4[%c0_22, %c0_23] : memref<24x16xf32, #tpu.memory_space<vmem>>, vector<24x16xf32>
    %cst_24 = arith.constant dense<0.000000e+00> : vector<8x16xf32>
    %71 = tpu.matmul %69, %70, %cst_24 {dimension_numbers = #tpu.dot_dimension_numbers<[1], [0], [0], [1], [0, 0, 1, 1], [], []>} : vector<8x24xf32>, vector<24x16xf32>, vector<8x16xf32> -> vector<8x16xf32>
    %c0_25 = arith.constant 0 : index
    %c0_26 = arith.constant 0 : index
    %72 = vector.load %arg5[%c0_25, %c0_26] : memref<8x16xf32, #tpu.memory_space<vmem>>, vector<8x16xf32>
    tpu.vector_store %arg5[%c0_25, %c0_26], %71 {strides = array<i32>} : memref<8x16xf32, #tpu.memory_space<vmem>>, vector<8x16xf32>,
    return
  }
  func.func @transform_0(%arg0: i32) -> (i32, i32) {
    %c0_i32 = arith.constant 0 : i32
    %c0_i32_0 = arith.constant 0 : i32
    return %arg0, %c0_i32 : i32, i32
  }
  func.func @transform_1(%arg0: i32) -> (i32, i32) {
    %c0_i32 = arith.constant 0 : i32
    %c0_i32_0 = arith.constant 0 : i32
    %c0_i32_1 = arith.constant 0 : i32
    return %c0_i32, %c0_i32_0 : i32, i32
  }
  func.func @transform_2(%arg0: i32) -> (i32, i32) {
    %c0_i32 = arith.constant 0 : i32
    %c0_i32_0 = arith.constant 0 : i32
    %c0_i32_1 = arith.constant 0 : i32
    return %c0_i32, %c0_i32_0 : i32, i32
  }
  func.func @transform_3(%arg0: i32) -> (i32, i32) {
    %c0_i32 = arith.constant 0 : i32
    %c0_i32_0 = arith.constant 0 : i32
    %c0_i32_1 = arith.constant 0 : i32
    return %c0_i32, %c0_i32_0 : i32, i32
  }
  func.func @transform_4(%arg0: i32) -> (i32, i32) {
    %c0_i32 = arith.constant 0 : i32
    %c0_i32_0 = arith.constant 0 : i32
    return %arg0, %c0_i32 : i32, i32
  }
}

</mosaic_0001>

<bundles_post_ra>
// kernel: tpu_custom_call.1
= control target key start
LH: loop header
LB: loop body
LE: loop exit
PB: predicated region body
PF: predicated region fallthrough
CT: control target
= control target key end

     0   :  { %9 = vsyncpa [#allocation3], 0  ;;  %s423_s0 = inlined_call_operand.vmem [shape: f32[8,24], index: 0, kind: input, shape index: {}]   ;;  %s424_s1 = inlined_call_operand.hbm [shape: f32[48,48], index: 1, kind: input, shape index: {}]   ;;  %s425_s2 = inlined_call_operand.vmem [shape: f32[4,48], index: 2, kind: input, shape index: {}]   ;;  %s426_s3 = inlined_call_operand.vmem [shape: f32[24,16], index: 3, kind: input, shape index: {}]   ;;  %s427_s4 = inlined_call_operand.hbm [shape: f32[8,16], index: 4, kind: output, shape index: {}]  }
   0x1   :  { %10 = vsyncpa [#allocation4], 0  ;;  %s17_s17 = sshll.u32 %s424_s1, 4  ;;  %s343_s18 = smov [#allocation2]   ;;  %s18_s17 = int_to_ptr.hbm [resolvable:$true] %s17_s17 }
   0x2   :  { %s19_s19 = sshll.u32 %s343_s18, 4  ;;  %s344_s20 = smov 128   ;;  %s20_s19 = int_to_ptr.vmem [resolvable:$true] %s19_s19 }
   0x3   :  { %s345_s21 = smov 8  }
   0x4   :  { %25 = dma.hbm_to_vmem [thread:$0]  %s18_s17, 768, %s20_s19, [#allocation3], %s344_s20, %s344_s20, %s345_s21  }
   0x5   :  { %339 = dma.done.wait [#allocation3], 768  }
   0x6   :  { %340 = vsyncadd [#allocation3], 4294966528  ;;  %v37_v0 = vld [vmem:[#allocation2 + $0x10] sm:$0xff]  ;;  %v36_v1 = vld [vmem:[#allocation2 + $0x8] sm:$0xff]  ;;  %vm38_vm0 = vcmask 195584   ;;  %v346_v4 = vmov 8.0  }
   0x7   :  { %55 = vmatpush.msra.mxu0 %v37_v0  ;;  %v35_v2 = vld [vmem:[#allocation2] sm:$0xff]  ;;  %277 = vrcp.f32 %v346_v4  ;;  %vm64_vm1 = vcmask 392192   ;;  %v132_v42 = vld [vmem:[#allocation2 + $0x28] sm:$0xff]  ;;  %s347_s26 = smov 104   ;;  %v130_v58 = vld [vmem:[#allocation2 + $0x18] sm:$0xff]  ;;  %s348_s10 = smov [#allocation5]  }
   0x8   :  { %v34_v3 = vld [vmem:[%s423_s0] sm:$0xff]  ;;  %149 = vmatpush.msra.mxu1 %v132_v42  ;;  %s250_s11 = sshll.u32 %s348_s10, 4  ;;  %s252_s14 = sshll.u32 %s427_s4, 4  ;;  %s251_s11 = int_to_ptr.vmem [resolvable:$true] %s250_s11  ;;  %s253_s14 = int_to_ptr.hbm [resolvable:$true] %s252_s14 }
   0x9   :  { %56 = vmatpush.msra.mxu0 %v36_v1  ;;  %v273_v37 = vld [vmem:[%s425_s2] ss:$0 sm:$0xff]  ;;  %v274_v40 = vld [vmem:[%s425_s2 + $0x1] ss:$0 sm:$0xff] }
   0xa   :  { %v131_v43 = vld [vmem:[#allocation2 + $0x20] sm:$0xff] }
   0xb   :  { %57 = vmatpush.msra.mxu0 %v35_v2  ;;  %150 = vmatpush.msra.mxu1 %v131_v43  ;;  %v218_v43 = vld [vmem:[%s426_s3 + $0x8] sm:$0xff] }
   0xc   :  { %262 = vmatmul.msk.f32.vlgmr.msra.gmra.mxu0 %vm38_vm0, %v34_v3 }
   0xd   :  { %v278_v5 = vpop.eup %277  ;;  %151 = vmatpush.msra.mxu1 %v130_v58 }
   0xe   :  { %v73_v6 = vmul.f32 8.0, %v278_v5  ;;  %vm77_vm2 = vweird.f32 %v278_v5 }
  0x10   :  { %v74_v7 = vsub.f32 1.0, %v73_v6 }
  0x12   :  { %v75_v11 = vmul.f32 %v278_v5, %v74_v7 }
  0x14   :  { %v76_v14 = vadd.f32 %v278_v5, %v75_v11 }
  0x16   :  { %v382_v17 = vsel %vm77_vm2, %v278_v5, %v76_v14  ;;  %vm243_vm2 = vcmask 130048  }
  0x89   :  { %v59_v8 = vpop.f32.mrf.mxu0 }
  0x8a   :  { %v65_v9 = vsel %vm64_vm1, %v59_v8, 0.0 }
  0x8b   :  { %v66_v10 = vrot.slane %v65_v9, 4 }
  0x8d   :  { %v67_v12 = vadd.f32 %v66_v10, %v65_v9 }
  0x8f   :  { %v68_v13 = vrot.slane %v67_v12, 2 }
  0x91   :  { %v69_v15 = vadd.f32 %v68_v13, %v67_v12 }
  0x93   :  { %v70_v16 = vrot.slane %v69_v15, 1 }
  0x95   :  { %v71_v18 = vadd.f32 %v70_v16, %v69_v15 }
  0x97   :  { %v79_v19 = vmul.f32 %v382_v17, %v71_v18 }
  0x99   :  { %v80_v20 = vsub.f32 %v59_v8, %v79_v19 }
  0x9b   :  { %v81_v21 = vmul.f32 %v80_v20, %v80_v20 }
  0x9d   :  { %v82_v22 = vsel %vm64_vm1, %v81_v21, 0.0 }
  0x9e   :  { %v83_v23 = vrot.slane %v82_v22, 4 }
  0xa0   :  { %v84_v24 = vadd.f32 %v83_v23, %v82_v22 }
  0xa2   :  { %v85_v25 = vrot.slane %v84_v24, 2 }
  0xa4   :  { %v86_v26 = vadd.f32 %v85_v25, %v84_v24  ;;  %v275_v24 = vld [vmem:[%s425_s2 + $0x2] ss:$0 sm:$0xff] }
  0xa6   :  { %v87_v27 = vrot.slane %v86_v26, 1 }
  0xa8   :  { %v88_v28 = vadd.f32 %v87_v27, %v86_v26 }
  0xaa   :  { %v89_v29 = vmul.f32 %v88_v28, %v382_v17  ;;  %v219_v28 = vld [vmem:[%s426_s3 + $0x10] sm:$0xff] }
  0xab   :  { %236 = vmatpush.msra.mxu2 %v219_v28 }
  0xac   :  { %v90_v30 = vadd.f32 1e-05, %v89_v29 }
  0xad   :  { %237 = vmatpush.msra.mxu2 %v218_v43 }
  0xae   :  { %279 = vrsqrt.f32 %v90_v30  ;;  %vm97_vm4 = vweird.f32 %v90_v30 }
  0xb4   :  { %v280_v31 = vpop.eup %279 }
  0xb5   :  { %v92_v32 = vmul.f32 %v280_v31, %v90_v30  ;;  %vm98_vm3 = vweird.f32 %v280_v31 }
  0xb6   :  { %vm99_vm5 = vmor %vm97_vm4, %vm98_vm3 }
  0xb7   :  { %v93_v33 = vmul.f32 %v280_v31, %v92_v32 }
  0xb9   :  { %v94_v34 = vmul.f32 0.5, %v93_v33 }
  0xbb   :  { %v95_v35 = vsub.f32 1.5, %v94_v34 }
  0xbd   :  { %v96_v36 = vmul.f32 %v280_v31, %v95_v35 }
  0xbf   :  { %v100_v38 = vsel %vm99_vm5, %v280_v31, %v96_v36 }
  0xc0   :  { %v101_v39 = vmul.f32 %v100_v38, %v80_v20 }
  0xc2   :  { %v103_v41 = vmul.f32 %v273_v37, %v101_v39 }
  0xc4   :  { %v105_v44 = vadd.f32 %v274_v40, %v103_v41 }
  0xc6   :  { %v263_v45 = vmul.f32 -1.442695, %v105_v44 }
  0xc8   :  { %281 = vpow2.f32 %v263_v45 }
  0xce   :  { %v282_v46 = vpop.eup %281 }
  0xcf   :  { %v109_v47 = vadd.f32 1.0, %v282_v46 }
  0xd1   :  { %283 = vrcp.f32 %v109_v47  ;;  %v121_v51 = vand.u32 2147483648, %v109_v47  ;;  %v119_v53 = vand.u32 2147483647, %v109_v47  ;;  %vm115_vm7 = vweird.f32 %v109_v47 }
  0xd3   :  { %v122_v55 = vor.u32 1.1754944e-38, %v121_v51  ;;  %vm120_vm9 = vcmp.eq.f32.partialorder %v119_v53, 8.507059e+37 }
  0xd7   :  { %v284_v48 = vpop.eup %283 }
  0xd8   :  { %v111_v49 = vmul.f32 %v284_v48, %v109_v47  ;;  %vm116_vm6 = vweird.f32 %v284_v48 }
  0xd9   :  { %vm117_vm8 = vmor %vm115_vm7, %vm116_vm6 }
  0xda   :  { %v112_v50 = vsub.f32 1.0, %v111_v49 }
  0xdc   :  { %v113_v52 = vmul.f32 %v284_v48, %v112_v50 }
  0xde   :  { %v114_v54 = vadd.f32 %v284_v48, %v113_v52 }
  0xe0   :  { %v118_v56 = vsel %vm117_vm8, %v284_v48, %v114_v54 }
  0xe1   :  { %v123_v57 = vsel %vm120_vm9, %v122_v55, %v118_v56 }
  0xe2   :  { %126 = vrot.lane.b32.xlu0 %v123_v57, %s347_s26 }
 0x154   :  { %v127_v59 = vpop.permute.xlu0 %126 }
 0x155   :  { %v394_v60 = vmul.f32 %v127_v59, %v105_v44  ;;  %v217_v44 = vld [vmem:[%s426_s3] sm:$0xff] }
 0x156   :  { %238 = vmatpush.msra.mxu2 %v217_v44 }
 0x157   :  { %264 = vmatmul.msk.f32.vlgmr.msra.gmra.mxu1 %vm38_vm0, %v394_v60 }
 0x1d4   :  { %v153_v61 = vpop.f32.mrf.mxu1 }
 0x1d5   :  { %v158_v62 = vsel %vm64_vm1, %v153_v61, 0.0 }
 0x1d6   :  { %v159_v63 = vrot.slane %v158_v62, 4 }
 0x1d8   :  { %v160_v0 = vadd.f32 %v159_v63, %v158_v62 }
 0x1da   :  { %v161_v1 = vrot.slane %v160_v0, 2 }
 0x1dc   :  { %v162_v2 = vadd.f32 %v161_v1, %v160_v0 }
 0x1de   :  { %v163_v3 = vrot.slane %v162_v2, 1 }
 0x1e0   :  { %v164_v4 = vadd.f32 %v163_v3, %v162_v2 }
 0x1e2   :  { %v165_v5 = vmul.f32 %v164_v4, %v382_v17 }
 0x1e4   :  { %v166_v6 = vsub.f32 %v153_v61, %v165_v5 }
 0x1e6   :  { %v167_v7 = vmul.f32 %v166_v6, %v166_v6 }
 0x1e8   :  { %v168_v8 = vsel %vm64_vm1, %v167_v7, 0.0 }
 0x1e9   :  { %v169_v9 = vrot.slane %v168_v8, 4 }
 0x1eb   :  { %v170_v10 = vadd.f32 %v169_v9, %v168_v8 }
 0x1ed   :  { %v171_v11 = vrot.slane %v170_v10, 2 }
 0x1ef   :  { %v172_v12 = vadd.f32 %v171_v11, %v170_v10 }
 0x1f1   :  { %v173_v13 = vrot.slane %v172_v12, 1 }
 0x1f3   :  { %v174_v14 = vadd.f32 %v173_v13, %v172_v12 }
 0x1f5   :  { %v175_v15 = vmul.f32 %v174_v14, %v382_v17  ;;  %v276_v17 = vld [vmem:[%s425_s2 + $0x3] ss:$0 sm:$0xff] }
 0x1f7   :  { %v176_v16 = vadd.f32 1e-05, %v175_v15 }
 0x1f9   :  { %285 = vrsqrt.f32 %v176_v16  ;;  %vm183_vm11 = vweird.f32 %v176_v16 }
 0x1ff   :  { %v286_v18 = vpop.eup %285 }
 0x200   :  { %v178_v19 = vmul.f32 %v286_v18, %v176_v16  ;;  %vm184_vm10 = vweird.f32 %v286_v18 }
 0x201   :  { %vm185_vm12 = vmor %vm183_vm11, %vm184_vm10 }
 0x202   :  { %v179_v20 = vmul.f32 %v286_v18, %v178_v19 }
 0x204   :  { %v180_v21 = vmul.f32 0.5, %v179_v20 }
 0x206   :  { %v181_v22 = vsub.f32 1.5, %v180_v21 }
 0x208   :  { %v182_v23 = vmul.f32 %v286_v18, %v181_v22 }
 0x20a   :  { %v186_v25 = vsel %vm185_vm12, %v286_v18, %v182_v23 }
 0x20b   :  { %v187_v26 = vmul.f32 %v186_v25, %v166_v6 }
 0x20d   :  { %v189_v27 = vmul.f32 %v275_v24, %v187_v26 }
 0x20f   :  { %v191_v29 = vadd.f32 %v276_v17, %v189_v27 }
 0x211   :  { %v265_v30 = vmul.f32 -1.442695, %v191_v29 }
 0x213   :  { %287 = vpow2.f32 %v265_v30 }
 0x219   :  { %v288_v31 = vpop.eup %287 }
 0x21a   :  { %v195_v32 = vadd.f32 1.0, %v288_v31 }
 0x21c   :  { %289 = vrcp.f32 %v195_v32  ;;  %v207_v36 = vand.u32 2147483648, %v195_v32  ;;  %v205_v38 = vand.u32 2147483647, %v195_v32  ;;  %vm201_vm14 = vweird.f32 %v195_v32 }
 0x21e   :  { %v208_v40 = vor.u32 1.1754944e-38, %v207_v36  ;;  %vm206_vm1 = vcmp.eq.f32.partialorder %v205_v38, 8.507059e+37 }
 0x222   :  { %v290_v33 = vpop.eup %289 }
 0x223   :  { %v197_v34 = vmul.f32 %v290_v33, %v195_v32  ;;  %vm202_vm13 = vweird.f32 %v290_v33 }
 0x224   :  { %vm203_vm15 = vmor %vm201_vm14, %vm202_vm13 }
 0x225   :  { %v198_v35 = vsub.f32 1.0, %v197_v34 }
 0x227   :  { %v199_v37 = vmul.f32 %v290_v33, %v198_v35 }
 0x229   :  { %v200_v39 = vadd.f32 %v290_v33, %v199_v37 }
 0x22b   :  { %v204_v41 = vsel %vm203_vm15, %v290_v33, %v200_v39 }
 0x22c   :  { %v209_v42 = vsel %vm206_vm1, %v208_v40, %v204_v41 }
 0x22d   :  { %212 = vrot.lane.b32.xlu0 %v209_v42, %s347_s26 }
 0x29f   :  { %v213_v45 = vpop.permute.xlu0 %212 }
 0x2a0   :  { %v215_v46 = vmul.f32 %v213_v45, %v191_v29 }
 0x2a2   :  { %v216_v47 = vadd.f32 %v215_v46, %v394_v60 }
 0x2a4   :  { %266 = vmatmul.msk.f32.vlgmr.msra.gmra.mxu2 %vm38_vm0, %v216_v47 }
 0x327   :  { %v240_v48 = vpop.f32.mrf.mxu2 }
 0x328   :  { %244 = vst.msk [vmem:[#allocation5] sm:$0xff] %vm243_vm2, %v240_v48 }
 0x329   :  { %255 = dma.vmem_to_hbm [thread:$0]  %s251_s11, 128, %s253_s14, [#allocation4]  }
 0x32a   :  { %341 = dma.done.wait [#allocation4], 128  }
 0x32b   :  { %342 = vsyncadd [#allocation4], 4294967168 }
 0x32c   :  { %260 = vsyncpa [#allocation3], 1 }
 0x32d   :  { %261 = vsyncpa [#allocation4], 1 }

</bundles_post_ra>
